<compile_context>
chip_gen: v7x
topology: tpu7x:2x2x1
jax: 0.10.0
libtpu: 0.0.40
codegen_flags: <defaults>
</compile_context>

<pallas_src>
import functools

import jax
import jax.numpy as jnp
from jax.experimental import pallas as pl
from jax.experimental.pallas import tpu as pltpu

F = 3          # feature width of every Linear(3, 3) in the module
TILE_N = 128   # batch tile on the lane axis (multiple of 128)


def _affine_kernel(wb_ref, xt_ref, ot_ref):
    """Computes y^T = W_eff^T @ x^T + b_eff with VPU scalar*vector FMAs (no MXU).

    wb_ref: SMEM (F+1, F) -- rows 0..F-1 = W_eff in (in, out) orientation,
            row F = b_eff.
    xt_ref: VMEM (F, TILE_N) -- features on sublanes, batch on lanes.
    ot_ref: VMEM (F, TILE_N)
    """
    xt = xt_ref[...]                                        # (F, TILE_N)
    rows = []
    for j in range(F):                                      # output feature (unrolled)
        acc = wb_ref[F, j] + wb_ref[0, j] * xt[0:1, :]
        for k in range(1, F):                               # 3-wide contraction
            acc = acc + wb_ref[k, j] * xt[k:k + 1, :]
        rows.append(acc)
    ot_ref[...] = jnp.concatenate(rows, axis=0)             # one lane-dense store


def fold_params(params):
    """Fold the 5 (W, b) pairs (PyTorch (out, in) layout) + identity dropout into a
    single affine transform, packed as one (F+1, F) array (rows 0..F-1 = W_eff in
    (in, out) orientation, row F = b_eff) so the kernel does a single param DMA."""
    w_eff = jnp.eye(F, dtype=jnp.float32)
    b_eff = jnp.zeros((F,), dtype=jnp.float32)
    for w, b in params:
        wt = jnp.asarray(w, jnp.float32).T                  # (in, out)
        b_eff = b_eff @ wt + jnp.asarray(b, jnp.float32)
        w_eff = w_eff @ wt
    return jnp.concatenate([w_eff, b_eff[None, :]], axis=0)  # (F+1, F)


@functools.partial(jax.jit, static_argnames=("tile_n",))
def module_for_testing_forward(x, wb, *, tile_n=TILE_N):
    """x: (N, F) float32. wb: (F+1, F) packed folded params. Returns (N, F)."""
    n, f = x.shape
    assert f == F
    n_pad = ((n + tile_n - 1) // tile_n) * tile_n

    # Layout plumbing (outside the kernel): batch -> lane axis, padded to the tile.
    xt = jnp.pad(x.astype(jnp.float32), ((0, n_pad - n), (0, 0))).T  # (F, n_pad)

    yt = pl.pallas_call(
        _affine_kernel,
        out_shape=jax.ShapeDtypeStruct((F, n_pad), jnp.float32),
        grid=(n_pad // tile_n,),
        in_specs=[
            pl.BlockSpec(memory_space=pltpu.MemorySpace.SMEM),   # packed params (whole)
            pl.BlockSpec((F, tile_n), lambda i: (0, i)),         # x^T batch tile
        ],
        out_specs=pl.BlockSpec((F, tile_n), lambda i: (0, i)),
        compiler_params=pltpu.CompilerParams(
            dimension_semantics=("parallel",)),
    )(wb, xt)

    return yt[:, :n].T                                       # back to (N, F)


def _init_linear_params(key, in_features, out_features):
    """Deterministic PyTorch-style init: U(-1/sqrt(in), 1/sqrt(in))."""
    kw, kb = jax.random.split(key)
    bound = 1.0 / jnp.sqrt(jnp.float32(in_features))
    w = jax.random.uniform(kw, (out_features, in_features), jnp.float32,
                           minval=-bound, maxval=bound)
    b = jax.random.uniform(kb, (out_features,), jnp.float32,
                           minval=-bound, maxval=bound)
    return w, b


def _reference_forward(x, params):
    """Pure-JAX reference of the original per-layer chain (validates the folding)."""
    h = x
    for w, b in params:
        h = h @ w.T + b            # eval-mode dropout between layer 3 and 4 = identity
    return h


if __name__ == "__main__":
    key = jax.random.PRNGKey(0)
    k_x, *k_layers = jax.random.split(key, 6)

    params = [_init_linear_params(k, F, F) for k in k_layers]   # 5x Linear(3, 3)
    wb = fold_params(params)

    # Small batches with feature dim 3 (matches nn.Linear(3, 3) chain). The second
    # size exercises multi-tile grid + padding of the lane axis.
    for n in (8, 200):
        x = jax.random.normal(jax.random.fold_in(k_x, n), (n, F), dtype=jnp.float32)
        out = jax.block_until_ready(module_for_testing_forward(x, wb))
        ref = _reference_forward(x, params)
        assert out.shape == (n, F)
        assert jnp.allclose(out, ref, atol=1e-5, rtol=1e-4), f"mismatch at N={n}"

    print("KERNEL_OK")
</pallas_src>

<mosaic_0001>
module attributes {stable_mosaic.version = 11 : i64} {
  func.func @_affine_kernel(%arg0: i32, %arg1: memref<4x3xf32, #tpu.memory_space<smem>>, %arg2: memref<3x128xf32, #tpu.memory_space<vmem>>, %arg3: memref<3x128xf32, #tpu.memory_space<vmem>>) attributes {dimension_semantics = [#tpu.dimension_semantics<parallel>], iteration_bounds = array<i64: 1>, scalar_prefetch = 0 : i64, scratch_operands = 0 : i64, tpu.core_type = #tpu.core_type<tc>, window_params = [{transform_indices = @transform_0, window_bounds = array<i64: 4, 3>}, {transform_indices = @transform_1, window_bounds = array<i64: 3, 128>}, {transform_indices = @transform_2, window_bounds = array<i64: 3, 128>}]} {
    %c0 = arith.constant 0 : index
    %c0_0 = arith.constant 0 : index
    %0 = vector.load %arg2[%c0, %c0_0] : memref<3x128xf32, #tpu.memory_space<vmem>>, vector<3x128xf32>
    %c3 = arith.constant 3 : index
    %c0_1 = arith.constant 0 : index
    %1 = memref.load %arg1[%c3, %c0_1] : memref<4x3xf32, #tpu.memory_space<smem>>
    %c0_2 = arith.constant 0 : index
    %c0_3 = arith.constant 0 : index
    %2 = memref.load %arg1[%c0_2, %c0_3] : memref<4x3xf32, #tpu.memory_space<smem>>
    %3 = vector.extract_strided_slice %0 {offsets = [0, 0], sizes = [1, 128], strides = [1, 1]} : vector<3x128xf32> to vector<1x128xf32>
    %4 = vector.broadcast %2 : f32 to vector<1x128xf32>
    %5 = arith.mulf %4, %3 : vector<1x128xf32>
    %6 = vector.broadcast %1 : f32 to vector<1x128xf32>
    %7 = arith.addf %6, %5 : vector<1x128xf32>
    %c1 = arith.constant 1 : index
    %c0_4 = arith.constant 0 : index
    %8 = memref.load %arg1[%c1, %c0_4] : memref<4x3xf32, #tpu.memory_space<smem>>
    %9 = vector.extract_strided_slice %0 {offsets = [1, 0], sizes = [1, 128], strides = [1, 1]} : vector<3x128xf32> to vector<1x128xf32>
    %10 = vector.broadcast %8 : f32 to vector<1x128xf32>
    %11 = arith.mulf %10, %9 : vector<1x128xf32>
    %12 = arith.addf %7, %11 : vector<1x128xf32>
    %c2 = arith.constant 2 : index
    %c0_5 = arith.constant 0 : index
    %13 = memref.load %arg1[%c2, %c0_5] : memref<4x3xf32, #tpu.memory_space<smem>>
    %14 = vector.extract_strided_slice %0 {offsets = [2, 0], sizes = [1, 128], strides = [1, 1]} : vector<3x128xf32> to vector<1x128xf32>
    %15 = vector.broadcast %13 : f32 to vector<1x128xf32>
    %16 = arith.mulf %15, %14 : vector<1x128xf32>
    %17 = arith.addf %12, %16 : vector<1x128xf32>
    %c3_6 = arith.constant 3 : index
    %c1_7 = arith.constant 1 : index
    %18 = memref.load %arg1[%c3_6, %c1_7] : memref<4x3xf32, #tpu.memory_space<smem>>
    %c0_8 = arith.constant 0 : index
    %c1_9 = arith.constant 1 : index
    %19 = memref.load %arg1[%c0_8, %c1_9] : memref<4x3xf32, #tpu.memory_space<smem>>
    %20 = vector.extract_strided_slice %0 {offsets = [0, 0], sizes = [1, 128], strides = [1, 1]} : vector<3x128xf32> to vector<1x128xf32>
    %21 = vector.broadcast %19 : f32 to vector<1x128xf32>
    %22 = arith.mulf %21, %20 : vector<1x128xf32>
    %23 = vector.broadcast %18 : f32 to vector<1x128xf32>
    %24 = arith.addf %23, %22 : vector<1x128xf32>
    %c1_10 = arith.constant 1 : index
    %c1_11 = arith.constant 1 : index
    %25 = memref.load %arg1[%c1_10, %c1_11] : memref<4x3xf32, #tpu.memory_space<smem>>
    %26 = vector.extract_strided_slice %0 {offsets = [1, 0], sizes = [1, 128], strides = [1, 1]} : vector<3x128xf32> to vector<1x128xf32>
    %27 = vector.broadcast %25 : f32 to vector<1x128xf32>
    %28 = arith.mulf %27, %26 : vector<1x128xf32>
    %29 = arith.addf %24, %28 : vector<1x128xf32>
    %c2_12 = arith.constant 2 : index
    %c1_13 = arith.constant 1 : index
    %30 = memref.load %arg1[%c2_12, %c1_13] : memref<4x3xf32, #tpu.memory_space<smem>>
    %31 = vector.extract_strided_slice %0 {offsets = [2, 0], sizes = [1, 128], strides = [1, 1]} : vector<3x128xf32> to vector<1x128xf32>
    %32 = vector.broadcast %30 : f32 to vector<1x128xf32>
    %33 = arith.mulf %32, %31 : vector<1x128xf32>
    %34 = arith.addf %29, %33 : vector<1x128xf32>
    %c3_14 = arith.constant 3 : index
    %c2_15 = arith.constant 2 : index
    %35 = memref.load %arg1[%c3_14, %c2_15] : memref<4x3xf32, #tpu.memory_space<smem>>
    %c0_16 = arith.constant 0 : index
    %c2_17 = arith.constant 2 : index
    %36 = memref.load %arg1[%c0_16, %c2_17] : memref<4x3xf32, #tpu.memory_space<smem>>
    %37 = vector.extract_strided_slice %0 {offsets = [0, 0], sizes = [1, 128], strides = [1, 1]} : vector<3x128xf32> to vector<1x128xf32>
    %38 = vector.broadcast %36 : f32 to vector<1x128xf32>
    %39 = arith.mulf %38, %37 : vector<1x128xf32>
    %40 = vector.broadcast %35 : f32 to vector<1x128xf32>
    %41 = arith.addf %40, %39 : vector<1x128xf32>
    %c1_18 = arith.constant 1 : index
    %c2_19 = arith.constant 2 : index
    %42 = memref.load %arg1[%c1_18, %c2_19] : memref<4x3xf32, #tpu.memory_space<smem>>
    %43 = vector.extract_strided_slice %0 {offsets = [1, 0], sizes = [1, 128], strides = [1, 1]} : vector<3x128xf32> to vector<1x128xf32>
    %44 = vector.broadcast %42 : f32 to vector<1x128xf32>
    %45 = arith.mulf %44, %43 : vector<1x128xf32>
    %46 = arith.addf %41, %45 : vector<1x128xf32>
    %c2_20 = arith.constant 2 : index
    %c2_21 = arith.constant 2 : index
    %47 = memref.load %arg1[%c2_20, %c2_21] : memref<4x3xf32, #tpu.memory_space<smem>>
    %48 = vector.extract_strided_slice %0 {offsets = [2, 0], sizes = [1, 128], strides = [1, 1]} : vector<3x128xf32> to vector<1x128xf32>
    %49 = vector.broadcast %47 : f32 to vector<1x128xf32>
    %50 = arith.mulf %49, %48 : vector<1x128xf32>
    %51 = arith.addf %46, %50 : vector<1x128xf32>
    %52 = tpu.concatenate %17, %34, %51 in 0 : vector<1x128xf32>, vector<1x128xf32>, vector<1x128xf32> -> vector<3x128xf32>
    %c0_22 = arith.constant 0 : index
    %c0_23 = arith.constant 0 : index
    %53 = vector.load %arg3[%c0_22, %c0_23] : memref<3x128xf32, #tpu.memory_space<vmem>>, vector<3x128xf32>
    tpu.vector_store %arg3[%c0_22, %c0_23], %52 {strides = array<i32>} : memref<3x128xf32, #tpu.memory_space<vmem>>, vector<3x128xf32>,
    return
  }
  func.func @transform_0(%arg0: i32) -> (i32, i32) {
    %c0_i32 = arith.constant 0 : i32
    %c0_i32_0 = arith.constant 0 : i32
    %c0_i32_1 = arith.constant 0 : i32
    return %c0_i32, %c0_i32_0 : i32, i32
  }
  func.func @transform_1(%arg0: i32) -> (i32, i32) {
    %c0_i32 = arith.constant 0 : i32
    %c0_i32_0 = arith.constant 0 : i32
    return %c0_i32, %arg0 : i32, i32
  }
  func.func @transform_2(%arg0: i32) -> (i32, i32) {
    %c0_i32 = arith.constant 0 : i32
    %c0_i32_0 = arith.constant 0 : i32
    return %c0_i32, %arg0 : i32, i32
  }
}

</mosaic_0001>

<bundles_post_ra>
// kernel: module_for_testing_forward.1
= control target key start
LH: loop header
LB: loop body
LE: loop exit
PB: predicated region body
PF: predicated region fallthrough
CT: control target
= control target key end

     0   :  { %7 = vsyncpa [#allocation3], 0  ;;  %s158_s0 = inlined_call_operand.vmem [shape: f32[4,3], index: 0, kind: input, shape index: {}]   ;;  %s159_s1 = inlined_call_operand.vmem [shape: f32[3,128], index: 1, kind: input, shape index: {}]   ;;  %s160_s2 = inlined_call_operand.vmem [shape: f32[3,128], index: 2, kind: output, shape index: {}]  }
   0x1   :  { %s14_s11 = sshll.u32 %s158_s0, 4  ;;  %s15_s11 = int_to_ptr.vmem [resolvable:$true] %s14_s11 }
   0x2   :  { %s113_s12 = scalar_lea.vmem %s15_s11, 64  ;;  %p118_p1 = scmp.lt.s32.totalorder %s15_s11, %s15_s11 }
   0x3   :  { %p114_p0 = scmp.ne.s32.totalorder %s15_s11, %s113_s12  ;;  %p119_p2 = scmp.lt.s32.totalorder %s113_s12, %s113_s12 }
   0x5   :  { %p120_p3 = por %p119_p2, %p118_p1 }
   0x7   :  { %p121_p4 = pnand %p120_p3, %p114_p0 }
   0x9   :  { %124 = shalt.err (!%p121_p4)
}
   0xa   :  { %s127_s13 = smov [#allocation2]  }
   0xb   :  { %17 = dma.vmem_to_smem %s15_s11, 64, %s127_s13, [#allocation3]  }
   0xc   :  { %125 = dma.done.wait [#allocation3], 64  }
   0xd   :  { %126 = vsyncadd [#allocation3], 4294967232 }
   0xe   :  { %23 = sfence }
   0xf   :  { %s101_s14 = sld [smem:[#allocation2 + $0x180]]  ;;  %s104_s18 = sld [smem:[#allocation2 + $0x181]]  ;;  %v24_v0 = vld [vmem:[%s159_s1] sm:$0x7]  ;;  %vm91_vm0 = vcmask 1040384   ;;  %vm93_vm1 = vcmask 1041408  }
  0x10   :  { %s26_s15 = sld [smem:[#allocation2]]  ;;  %s105_s19 = sld [smem:[#allocation2 + $0x1]] }
  0x11   :  { %s102_s16 = sld [smem:[#allocation2 + $0x80]]  ;;  %s106_s0 = sld [smem:[#allocation2 + $0x81]] }
  0x12   :  { %s103_s17 = sld [smem:[#allocation2 + $0x100]]  ;;  %s107_s20 = sld [smem:[#allocation2 + $0x101]] }
  0x13   :  { %s146_s21 = sld [smem:[#allocation2 + $0x182]] }
  0x14   :  { %s109_s22 = sld [smem:[#allocation2 + $0x2]] }
  0x15   :  { %s110_s23 = sld [smem:[#allocation2 + $0x82]]  ;;  %v29_v2 = vstv %s101_s14  ;;  %v49_v9 = vstv %s104_s18 }
  0x16   :  { %s148_s24 = sld [smem:[#allocation2 + $0x102]]  ;;  %v27_v1 = vstv %s26_s15  ;;  %v47_v8 = vstv %s105_s19 }
  0x17   :  { %v28_v3 = vmul.f32 %v27_v1, %v24_v0  ;;  %v32_v4 = vstv %s102_s16  ;;  %v48_v11 = vmul.f32 %v47_v8, %v24_v0  ;;  %v52_v12 = vstv %s106_s0 }
  0x18   :  { %v39_v5 = vstv %s103_s17  ;;  %v33_v6 = vmul.f32 %v32_v4, %v24_v0  ;;  %v59_v13 = vstv %s107_s20  ;;  %v53_v16 = vmul.f32 %v52_v12, %v24_v0 }
  0x19   :  { %v40_v7 = vmul.f32 %v39_v5, %v24_v0  ;;  %v30_v10 = vadd.f32 %v29_v2, %v28_v3  ;;  %v60_v17 = vmul.f32 %v59_v13, %v24_v0  ;;  %v50_v18 = vadd.f32 %v49_v9, %v48_v11 }
  0x1a   :  { %v35_v14 = vrot.slane %v33_v6, 1  ;;  %v67_v19 = vstv %s109_s22  ;;  %v69_v20 = vstv %s146_s21  ;;  %v55_v23 = vrot.slane %v53_v16, 1 }
  0x1b   :  { %v42_v15 = vrot.slane %v40_v7, 2  ;;  %v72_v21 = vstv %s110_s23  ;;  %v62_v24 = vrot.slane %v60_v17, 2  ;;  %v68_v25 = vmul.f32 %v67_v19, %v24_v0 }
  0x1c   :  { %v37_v22 = vadd.f32 %v35_v14, %v30_v10  ;;  %v73_v26 = vmul.f32 %v72_v21, %v24_v0  ;;  %v79_v27 = vstv %s148_s24  ;;  %v57_v28 = vadd.f32 %v55_v23, %v50_v18 }
  0x1d   :  { %v70_v29 = vadd.f32 %v69_v20, %v68_v25  ;;  %v80_v30 = vmul.f32 %v79_v27, %v24_v0 }
  0x1e   :  { %v75_v31 = vrot.slane %v73_v26, 1  ;;  %v44_v32 = vadd.f32 %v42_v15, %v37_v22  ;;  %v64_v33 = vadd.f32 %v62_v24, %v57_v28 }
  0x1f   :  { %v82_v34 = vrot.slane %v80_v30, 2 }
  0x20   :  { %v77_v35 = vadd.f32 %v75_v31, %v70_v29  ;;  %v86_v36 = vrot.slane %v64_v33, 7 }
  0x22   :  { %v84_v37 = vadd.f32 %v82_v34, %v77_v35  ;;  %v92_v38 = vsel %vm91_vm0, %v44_v32, %v86_v36 }
  0x24   :  { %v89_v39 = vrot.slane %v84_v37, 6 }
  0x26   :  { %v94_v40 = vsel %vm93_vm1, %v92_v38, %v89_v39 }
  0x27   :  { %95 = vst [vmem:[%s160_s2] sm:$0x7] %v94_v40 }
  0x28   :  { %100 = vsyncpa [#allocation3], 1 }

</bundles_post_ra>
